<compile_context>
chip_gen: v6e
topology: v6e:2x2x1
jax: 0.10.0
libtpu: 0.0.40
codegen_flags: <defaults>
</compile_context>

<pallas_src>
import math

import jax
import jax.numpy as jnp
import numpy as np
from jax.experimental import pallas as pl
from jax.experimental.pallas import tpu as pltpu


def _round_up(x, m):
    return (x + m - 1) // m * m


# ---------------------------------------------------------------------------
# Pallas kernel: one lane-dense MXU matmul + bias + ReLU per (N*T)-row tile.
# ---------------------------------------------------------------------------
def _gcn_fused_kernel(x_ref, w_ref, b_ref, o_ref):
    # x_ref: (bm, Din)   w_ref: (Din, Dout_pad)   b_ref: (1, Dout_pad)
    # o_ref: (bm, Dout_pad)
    acc = jnp.dot(x_ref[...], w_ref[...], preferred_element_type=jnp.float32)
    # bias + ReLU epilogue fused, stored directly into the output block
    o_ref[...] = jnp.maximum(acc + b_ref[...], 0.0).astype(o_ref.dtype)


# ---------------------------------------------------------------------------
# Wrapper: parameter folding (plain JAX, parameters only) + pallas_call.
# ---------------------------------------------------------------------------
def unit_gcn_forward(x0_nchw, params, *, groups, eps=1e-5,
                     block_m=128, compute_dtype=jnp.float32):
    (decouple_a, lin_w, lin_b,
     bn0_g, bn0_b, bn0_rm, bn0_rv,
     bn_g, bn_b, bn_rm, bn_rv,
     down) = params

    n, c_in, t, v = x0_nchw.shape
    num_subset = decouple_a.shape[0]
    c_out = bn_g.shape[0]

    # ---------------- parameter-side folding (tiny, O(V^2 C^2)) --------------
    rep = c_out // groups
    learn_a = jnp.tile(decouple_a, (1, rep, 1, 1))            # (3, C_out, V, V)
    col_sum = jnp.sum(learn_a, axis=2, keepdims=True)         # (3, C_out, 1, V)
    a_norm = learn_a / (col_sum + 0.001)                      # A @ D^-1 (column norm)

    s0 = bn0_g / jnp.sqrt(bn0_rv + eps)                       # (3*C_out,)
    t0 = bn0_b - bn0_rm * s0
    s1 = bn_g / jnp.sqrt(bn_rv + eps)                         # (C_out,)
    t1 = bn_b - bn_rm * s1

    lw_r = lin_w.reshape(c_in, num_subset, c_out)             # [i, k, c]
    s0_r = s0.reshape(num_subset, c_out)
    lb_r = lin_b.reshape(num_subset, c_out)
    t0_r = t0.reshape(num_subset, c_out)

    # main path:  out[m,w,c] = sum_{v,i} x[m,v,i] * Wm[v,i,w,c] + bm[w,c]
    wm = jnp.einsum("ikc,kcvw->viwc", lw_r * s0_r[None], a_norm)
    bm = jnp.einsum("kc,kcvw->wc", s0_r * lb_r + t0_r, a_norm)
    w_main = wm * s1[None, None, None, :]
    b_main = bm * s1[None, :] + t1[None, :]

    # residual / down path folded into the same (already dense) weight -> free
    eye_v = jnp.eye(v, dtype=jnp.float32)
    if down is None:
        assert c_in == c_out
        w_dn = jnp.einsum("vw,ic->viwc", eye_v, jnp.eye(c_out, dtype=jnp.float32))
        b_dn = jnp.zeros((v, c_out), jnp.float32)
    else:
        wd, bd, bnd_g, bnd_b, bnd_rm, bnd_rv = down            # 1x1 conv + BN
        sd = bnd_g / jnp.sqrt(bnd_rv + eps)
        td = bnd_b - bnd_rm * sd
        w_dn = jnp.einsum("vw,ci->viwc", eye_v, wd * sd[:, None])
        b_dn = jnp.broadcast_to((sd * bd + td)[None, :], (v, c_out))

    d_in = v * c_in
    d_out = v * c_out
    w_comb = (w_main + w_dn).reshape(d_in, d_out)
    b_comb = (b_main + b_dn).reshape(1, d_out)

    # lane-dense output: pad D_out up to a multiple of 128 (unmasked stores,
    # full MXU N tile); sliced back after the kernel.
    d_out_pad = _round_up(d_out, 128)
    if d_out_pad != d_out:
        w_comb = jnp.pad(w_comb, ((0, 0), (0, d_out_pad - d_out)))
        b_comb = jnp.pad(b_comb, ((0, 0), (0, d_out_pad - d_out)))

    # ------------- data-plane layout: (N, Cin, T, V) -> (N*T, V*Cin) ---------
    x_flat = jnp.transpose(x0_nchw, (0, 2, 3, 1)).reshape(n * t, d_in)
    m = n * t
    block_m = _round_up(max(1, min(block_m, m)), 8)            # sublane multiple
    m_pad = _round_up(m, block_m)
    if m_pad != m:
        x_flat = jnp.pad(x_flat, ((0, m_pad - m), (0, 0)))

    x_kern = x_flat.astype(compute_dtype)                      # bf16 on v6e/v7x
    w_kern = w_comb.astype(compute_dtype)
    b_kern = b_comb.astype(jnp.float32)                        # f32 epilogue

    grid_m = m_pad // block_m
    itemsize = jnp.dtype(compute_dtype).itemsize
    cost = pl.CostEstimate(
        flops=2 * m_pad * d_in * d_out_pad,
        transcendentals=0,
        bytes_accessed=(m_pad * d_in + d_in * d_out_pad) * itemsize
        + (m_pad * d_out_pad + d_out_pad) * 4,
    )

    out_flat = pl.pallas_call(
        _gcn_fused_kernel,
        out_shape=jax.ShapeDtypeStruct((m_pad, d_out_pad), jnp.float32),
        grid_spec=pltpu.PrefetchScalarGridSpec(
            num_scalar_prefetch=0,
            grid=(grid_m,),
            in_specs=[
                pl.BlockSpec((block_m, d_in), lambda i: (i, 0)),
                pl.BlockSpec((d_in, d_out_pad), lambda i: (0, 0)),
                pl.BlockSpec((1, d_out_pad), lambda i: (0, 0)),
            ],
            out_specs=pl.BlockSpec((block_m, d_out_pad), lambda i: (i, 0)),
        ),
        compiler_params=pltpu.CompilerParams(
            dimension_semantics=("parallel",),
        ),
        cost_estimate=cost,
    )(x_kern, w_kern, b_kern)

    out = out_flat[:m, :d_out].reshape(n, t, v, c_out)
    out = jnp.transpose(out, (0, 3, 1, 2))                     # back to NCHW

    # correlation = sum_{k,w} max_g DecoupleA[k,g,v,w]  (parameter-only, tiny)
    correlation = jnp.sum(jnp.max(decouple_a, axis=1), axis=(0, 2))
    return out, correlation


# ---------------------------------------------------------------------------
# Parameter init mirroring the PyTorch module's __init__.
# ---------------------------------------------------------------------------
def init_params(key, in_channels, out_channels, a_base, groups, num_subset=3):
    v = a_base.shape[-1]
    k_lin, k_down = jax.random.split(key)

    decouple_a = jnp.tile(
        jnp.asarray(a_base, jnp.float32).reshape(num_subset, 1, v, v),
        (1, groups, 1, 1))                                     # (3, groups, V, V)

    # Linear_weight ~ N(0, sqrt(0.5 / (out*num_subset))), Linear_bias = 1e-6
    lin_w = (math.sqrt(0.5 / (out_channels * num_subset))
             * jax.random.normal(k_lin, (in_channels, out_channels * num_subset),
                                 jnp.float32))
    lin_b = jnp.full((out_channels * num_subset,), 1e-6, jnp.float32)

    bn0_g = jnp.ones((out_channels * num_subset,), jnp.float32)   # bn_init(bn0, 1)
    bn0_b = jnp.zeros_like(bn0_g)
    bn0_rm = jnp.zeros_like(bn0_g)
    bn0_rv = jnp.ones_like(bn0_g)

    bn_g = jnp.full((out_channels,), 1e-6, jnp.float32)           # bn_init(bn, 1e-6)
    bn_b = jnp.zeros((out_channels,), jnp.float32)
    bn_rm = jnp.zeros((out_channels,), jnp.float32)
    bn_rv = jnp.ones((out_channels,), jnp.float32)

    if in_channels != out_channels:
        # Conv2d(in, out, 1) kaiming_normal(fan_out): std = sqrt(2 / out), bias = 0
        wd = (math.sqrt(2.0 / out_channels)
              * jax.random.normal(k_down, (out_channels, in_channels), jnp.float32))
        bd = jnp.zeros((out_channels,), jnp.float32)
        down = (wd, bd,
                jnp.ones((out_channels,), jnp.float32),
                jnp.zeros((out_channels,), jnp.float32),
                jnp.zeros((out_channels,), jnp.float32),
                jnp.ones((out_channels,), jnp.float32))
    else:
        down = None

    return (decouple_a, lin_w, lin_b,
            bn0_g, bn0_b, bn0_rm, bn0_rv,
            bn_g, bn_b, bn_rm, bn_rv,
            down)


# ---------------------------------------------------------------------------
# Pure-JAX literal reference (un-folded) for correctness checking.
# ---------------------------------------------------------------------------
def _reference_unit_gcn(x0, params, *, groups, eps=1e-5):
    (decouple_a, lin_w, lin_b,
     bn0_g, bn0_b, bn0_rm, bn0_rv,
     bn_g, bn_b, bn_rm, bn_rv, down) = params

    def bn_inf(x, g, b, rm, rv):
        s = g / jnp.sqrt(rv + eps)
        return x * s[None, :, None, None] + (b - rm * s)[None, :, None, None]

    num_subset = decouple_a.shape[0]
    c_out = bn_g.shape[0]
    learn_a = jnp.tile(decouple_a, (1, c_out // groups, 1, 1))     # (3, C_out, V, V)

    def norm(a_k):                                                 # (C_out, V, V)
        d = jnp.sum(a_k, axis=1, keepdims=True)                    # column sums
        return a_k / (d + 0.001)

    a_norm = jnp.stack([norm(learn_a[k]) for k in range(num_subset)], axis=0)

    x = jnp.einsum("nctw,cd->ndtw", x0, lin_w) + lin_b[None, :, None, None]
    x = bn_inf(x, bn0_g, bn0_b, bn0_rm, bn0_rv)
    n, kc, t, v = x.shape
    x = x.reshape(n, num_subset, kc // num_subset, t, v)
    x = jnp.einsum("nkctv,kcvw->nctw", x, a_norm)
    x = bn_inf(x, bn_g, bn_b, bn_rm, bn_rv)

    if down is None:
        res = x0
    else:
        wd, bd, bnd_g, bnd_b, bnd_rm, bnd_rv = down
        res = jnp.einsum("nctw,dc->ndtw", x0, wd) + bd[None, :, None, None]
        res = bn_inf(res, bnd_g, bnd_b, bnd_rm, bnd_rv)

    out = jax.nn.relu(x + res)
    correlation = jnp.sum(jnp.max(decouple_a, axis=1), axis=(0, 2))
    return out, correlation


if __name__ == "__main__":
    key = jax.random.PRNGKey(0)
    k_a, k_p, k_x = jax.random.split(key, 3)

    N, C_IN, C_OUT, T, V = 2, 4, 8, 16, 16
    GROUPS, NUM_SUBSET = 4, 3

    a_base = jax.random.uniform(k_a, (NUM_SUBSET, V, V), jnp.float32)
    params = init_params(k_p, C_IN, C_OUT, a_base, GROUPS, NUM_SUBSET)
    x0 = jax.random.normal(k_x, (N, C_IN, T, V), jnp.float32)

    # f32 run (tight check)
    out, corr = unit_gcn_forward(x0, params, groups=GROUPS, block_m=8)
    out, corr = jax.block_until_ready((out, corr))

    ref_out, ref_corr = _reference_unit_gcn(x0, params, groups=GROUPS)
    ref_out, ref_corr = jax.block_until_ready((ref_out, ref_corr))

    assert out.shape == ref_out.shape == (N, C_OUT, T, V), (out.shape, ref_out.shape)
    assert corr.shape == (V,), corr.shape
    assert np.allclose(np.asarray(out), np.asarray(ref_out), atol=1e-4, rtol=1e-4), \
        float(np.max(np.abs(np.asarray(out) - np.asarray(ref_out))))
    assert np.allclose(np.asarray(corr), np.asarray(ref_corr), atol=1e-5, rtol=1e-5)

    # bf16 MXU operands (recommended on v6e/v7x), f32 accumulation (loose check)
    out_bf16, _ = unit_gcn_forward(x0, params, groups=GROUPS, block_m=8,
                                   compute_dtype=jnp.bfloat16)
    out_bf16 = jax.block_until_ready(out_bf16)
    assert np.allclose(np.asarray(out_bf16), np.asarray(ref_out), atol=5e-2, rtol=5e-2)

    print("KERNEL_OK")
</pallas_src>

<mosaic_0001>
module attributes {stable_mosaic.version = 11 : i64} {
  func.func @_gcn_fused_kernel(%arg0: i32, %arg1: memref<8x64xf32, #tpu.memory_space<vmem>>, %arg2: memref<64x128xf32, #tpu.memory_space<vmem>>, %arg3: memref<1x128xf32, #tpu.memory_space<vmem>>, %arg4: memref<8x128xf32, #tpu.memory_space<vmem>>) attributes {dimension_semantics = [#tpu.dimension_semantics<parallel>], iteration_bounds = array<i64: 4>, scalar_prefetch = 0 : i64, scratch_operands = 0 : i64, tpu.core_type = #tpu.core_type<tc>, window_params = [{transform_indices = @transform_0, window_bounds = array<i64: 8, 64>}, {pipeline_mode = #tpu.pipeline_mode<synchronous>, transform_indices = @transform_1, window_bounds = array<i64: 64, 128>}, {pipeline_mode = #tpu.pipeline_mode<synchronous>, transform_indices = @transform_2, window_bounds = array<i64: 1, 128>}, {transform_indices = @transform_3, window_bounds = array<i64: 8, 128>}]} {
    %c0 = arith.constant 0 : index
    %c0_0 = arith.constant 0 : index
    %0 = vector.load %arg1[%c0, %c0_0] : memref<8x64xf32, #tpu.memory_space<vmem>>, vector<8x64xf32>
    %c0_1 = arith.constant 0 : index
    %c0_2 = arith.constant 0 : index
    %1 = vector.load %arg2[%c0_1, %c0_2] : memref<64x128xf32, #tpu.memory_space<vmem>>, vector<64x128xf32>
    %cst = arith.constant dense<0.000000e+00> : vector<8x128xf32>
    %2 = tpu.matmul %0, %1, %cst {dimension_numbers = #tpu.dot_dimension_numbers<[1], [0], [0], [1], [0, 0, 1, 1], [], []>} : vector<8x64xf32>, vector<64x128xf32>, vector<8x128xf32> -> vector<8x128xf32>
    %c0_3 = arith.constant 0 : index
    %c0_4 = arith.constant 0 : index
    %3 = vector.load %arg3[%c0_3, %c0_4] : memref<1x128xf32, #tpu.memory_space<vmem>>, vector<1x128xf32>
    %4 = vector.broadcast %3 : vector<1x128xf32> to vector<8x128xf32>
    %5 = arith.addf %2, %4 : vector<8x128xf32>
    %cst_5 = arith.constant 0.000000e+00 : f32
    %6 = vector.broadcast %cst_5 : f32 to vector<8x128xf32>
    %7 = arith.maximumf %5, %6 : vector<8x128xf32>
    %c0_6 = arith.constant 0 : index
    %c0_7 = arith.constant 0 : index
    %8 = vector.load %arg4[%c0_6, %c0_7] : memref<8x128xf32, #tpu.memory_space<vmem>>, vector<8x128xf32>
    tpu.vector_store %arg4[%c0_6, %c0_7], %7 {strides = array<i32>} : memref<8x128xf32, #tpu.memory_space<vmem>>, vector<8x128xf32>,
    return
  }
  func.func @transform_0(%arg0: i32) -> (i32, i32) {
    %c0_i32 = arith.constant 0 : i32
    %c0_i32_0 = arith.constant 0 : i32
    return %arg0, %c0_i32 : i32, i32
  }
  func.func @transform_1(%arg0: i32) -> (i32, i32) {
    %c0_i32 = arith.constant 0 : i32
    %c0_i32_0 = arith.constant 0 : i32
    %c0_i32_1 = arith.constant 0 : i32
    return %c0_i32, %c0_i32_0 : i32, i32
  }
  func.func @transform_2(%arg0: i32) -> (i32, i32) {
    %c0_i32 = arith.constant 0 : i32
    %c0_i32_0 = arith.constant 0 : i32
    %c0_i32_1 = arith.constant 0 : i32
    return %c0_i32, %c0_i32_0 : i32, i32
  }
  func.func @transform_3(%arg0: i32) -> (i32, i32) {
    %c0_i32 = arith.constant 0 : i32
    %c0_i32_0 = arith.constant 0 : i32
    return %arg0, %c0_i32 : i32, i32
  }
}

</mosaic_0001>

<bundles_post_ra>
// kernel: tpu_custom_call.1
= control target key start
LH: loop header
LB: loop body
LE: loop exit
PB: predicated region body
PF: predicated region fallthrough
CT: control target
= control target key end

     0   :  { %8 = vsyncpa [#allocation3], 0  ;;  %s802_s0 = inlined_call_operand.hbm [shape: f32[32,64], index: 0, kind: input, shape index: {}]   ;;  %s803_s1 = inlined_call_operand.hbm [shape: f32[64,128], index: 1, kind: input, shape index: {}]   ;;  %s804_s2 = inlined_call_operand.vmem [shape: f32[1,128], index: 2, kind: input, shape index: {}]   ;;  %s805_s3 = inlined_call_operand.hbm [shape: f32[32,128], index: 3, kind: output, shape index: {}]  }
   0x1   :  { %10 = vsyncpa [#allocation3 + $0x1], 0 }
   0x2   :  { %11 = vsyncpa [#allocation6], 0 }
   0x3   :  { %12 = vsyncpa [#allocation4], 0 }
   0x4   :  { %14 = vsyncpa [#allocation4 + $0x1], 0  ;;  %s643_s12 = smov 0   ;;  %s645_s13 = smov 0  }
   0x5   :  { %s647_s14 = smov 0   ;;  %s649_s15 = smov 0  }
   0x6 LB: > { %s664_s16 = sadd.s32 4294967295, %s614_s15   ;;  %s387_s17 = sadd.s32 4294967294, %s614_s15   ;;  %s614_s15 = sphi %s649_s15, %s826_s15   ;;  %s610_s14 = sphi %s647_s14, %s825_s14   ;;  %s606_s13 = sphi %s645_s13, %s824_s13   ;;  %s602_s12 = sphi %s643_s12, %s823_s12  }
   0x7   : > { %p40_p0 = scmp.ne.s32.totalorder %s606_s13, %s602_s12  ;;  %p806_p1 = scmp.eq.s32.totalorder %s664_s16, 0 }
   0x8   : > { %p112_p3 = scmp.eq.s32.totalorder %s387_s17, 3  ;;  %p388_p5 = scmp.ge.s32.totalorder %s614_s15, 1 }
   0x9   : > { %p673_p4 = por %p806_p1, %p40_p0  ;;  %p119_p7 = scmp.lt.s32.totalorder %s614_s15, 5 }
   0xa   : > { %p678_p6 = por %p112_p3, %p40_p0  ;;  %s616_s21 = smov [#allocation5]  }
   0xb   : > { %s810_s18 = scalar_select %p673_p4, 1, 0 }
   0xc   : > { %s811_s19 = scalar_select %p678_p6, 1, 0 }
   0xd   : > { %p683_p8 = pnand %p388_p5, %p119_p7  ;;  %s131_s22 = sshll.u32 %s616_s21, 4  ;;  %s132_s22 = int_to_ptr.vmem [resolvable:$true] %s131_s22 }
   0xe   : > { %s696_s24 = sadd.s32 1, %s614_s15   ;;  %s27_s25 = sadd.s32 1, %s610_s14 }
   0xf   : > { %s812_s20 = scalar_select %p683_p8, 1, 0 }
  0x10   : > { %p439_p9 = pneg %p683_p8  ;;  %s24_s26 = ssub.s32 %s614_s15, %s696_s24 }
  0x11   : > { %s503_s27 = scalar_lea.vmem %s132_s22, 1024  ;;  %p511_p3 = scmp.lt.s32.totalorder %s132_s22, %s132_s22 }
  0x12   : > { %p691_p10 = pnand %p439_p9, %p806_p1  ;;  %p504_p12 = scmp.ne.s32.totalorder %s132_s22, %s503_s27 }
  0x13   : > { %p512_p5 = scmp.lt.s32.totalorder %s503_s27, %s503_s27 }
  0x14   : > { %p494_p11 = pneg %p691_p10 }
  0x15   : > { %p513_p7 = por %p512_p5, %p511_p3 }
  0x16   : > { %p506_p13 = pnand %p504_p12, %p494_p11 }
  0x18   : > { %p507_p0 = pneg %p506_p13 }
  0x1a   : > { %p514_p2 = pnand %p513_p7, %p507_p0 }
  0x1c   : > { %517 = shalt.err (!%p514_p2)
}
  0x1d   : > { %s617_s28 = smov 128   ;;  %s618_s29 = smov 8  }
  0x1e   : > { %442 = dma.hbm_to_vmem [thread:$0]  (!%p691_p10), %s803_s1, 1024, %s132_s22, [#allocation6], %s617_s28, %s617_s28, %s618_s29  }
  0x1f   : > { %p25_p9 = scmp.eq.s32.totalorder %s24_s26, 0  ;;  %p34_p11 = scmp.ne.s32.totalorder %s610_s14, %s606_s13 }
  0x20   : > { %p35_p12 = scmp.eq.s32.totalorder %s614_s15, 0  ;;  %p452_p2 = scmp.lt.s32.totalorder %s614_s15, 4 }
  0x21   : > { %s713_s5 = scalar_select %p25_p9, %s610_s14, %s27_s25  }
  0x22   : > { %p36_p13 = por %p35_p12, %p34_p11  ;;  %p814_p0 = scmp.eq.s32.totalorder %s664_s16, 3 }
  0x23   : > { %s148_s7 = sand.u32 1, %s610_s14   ;;  %s392_s8 = sshll.u32 %s614_s15, 7 }
  0x24   : > { %p717_p3 = por %p814_p0, %p34_p11  ;;  %s391_s9 = sshll.u32 %s148_s7, 3 }
  0x25   : > { %s726_s17 = scalar_lea.hbm %s802_s0, %s392_s8  ;;  %s152_s21 = scalar_lea.vmem [#allocation2], %s391_s9 }
  0x26   : > { %s815_s6 = scalar_select %p717_p3, 1, 0 }
  0x27   : > { %s159_s22 = sshll.u32 %s152_s21, 4  ;;  %p728_p10 = pnand %p452_p2, %p36_p13  ;;  %s160_s22 = int_to_ptr.vmem [resolvable:$true] %s159_s22 }
  0x28   : > { %s149_s25 = scalar_lea.sflag [#allocation3], %s148_s7  ;;  %s518_s26 = scalar_lea.hbm %s726_s17, 128 }
  0x29   : > { %p519_p5 = scmp.ne.s32.totalorder %s726_s17, %s518_s26  ;;  %p520_p7 = pneg %p728_p10 }
  0x2a   : > { %s523_s29 = scalar_lea.hbm %s802_s0, 512  ;;  %p524_p12 = scmp.lt.s32.totalorder %s726_s17, %s802_s0 }
  0x2b   : > { %p521_p9 = pnand %p520_p7, %p519_p5  ;;  %p525_p2 = scmp.lt.s32.totalorder %s523_s29, %s518_s26 }
  0x2d   : > { %p522_p11 = pneg %p521_p9  ;;  %p526_p13 = por %p525_p2, %p524_p12 }
  0x2f   : > { %p527_p0 = pnand %p526_p13, %p522_p11 }
  0x31   : > { %530 = shalt.err (!%p527_p0)
}
  0x32   : > { %s531_s8 = scalar_lea.vmem %s160_s22, 128  ;;  %s619_s7 = smov [#allocation2]  }
  0x33   : > { %p532_p1 = scmp.ne.s32.totalorder %s160_s22, %s531_s8  ;;  %s536_s9 = sshll.u32 %s619_s7, 4  ;;  %s537_s9 = int_to_ptr.vmem [resolvable:$false] %s536_s9 }
  0x34   : > { %s538_s10 = scalar_lea.vmem %s537_s9, 256  ;;  %p539_p5 = scmp.lt.s32.totalorder %s160_s22, %s537_s9 }
  0x35   : > { %p534_p6 = pnand %p532_p1, %p520_p7  ;;  %p540_p9 = scmp.lt.s32.totalorder %s538_s10, %s531_s8 }
  0x37   : > { %p535_p3 = pneg %p534_p6  ;;  %p541_p4 = por %p540_p9, %p539_p5 }
  0x39   : > { %p542_p8 = pnand %p541_p4, %p535_p3 }
  0x3b   : > { %545 = shalt.err (!%p542_p8)
}
  0x3c   : > { %446 = dma.hbm_to_vmem [thread:$0]  (!%p728_p10), %s726_s17, 128, %s160_s22, %s149_s25  }
  0x3d   : > { %p817_p11 = scmp.ne.s32.totalorder %s812_s20, 0 }
  0x3e   : > { %s749_s11 = sand.u32 (!%p817_p11), 1, %s606_s13   ;;  %p818_p1 = scmp.ne.s32.totalorder (!%p817_p11), %s810_s18, 0 }
  0x3f   : > { %168 = sbr.rel (%p817_p11) target bundleno = 299 (0x12b), region = 32  ;;  %s394_s21 = sshll.u32 (!%p817_p11), %s749_s11, 3 }
  0x40   : > { %s171_s26 = scalar_lea.sflag (!%p817_p11), [#allocation3], %s749_s11  ;;  %s174_s27 = scalar_lea.vmem (!%p817_p11), [#allocation2], %s394_s21 }
  0x44   : > { %589 = dma.done.wait (%p818_p1), %s171_s26, 128  }
  0x45   : > { %591 = vsyncadd (%p818_p1), %s171_s26, 4294967168  ;;  %p819_p4 = scmp.eq.s32.totalorder %s664_s16, 0 }
  0x47   : > { %593 = dma.done.wait (%p819_p4), [#allocation6], 1024   ;;  %p820_p6 = pmov %p819_p4 }
  0x48   : > { %v620_v0 = vmov 0.0   ;;  %vm621_vm0 = vmmov 0   ;;  %v209_v1 = vld [vmem:[#allocation5 + $0x38] sm:$0xff]  ;;  %v208_v2 = vld [vmem:[#allocation5 + $0x30] sm:$0xff]  ;;  %v207_v3 = vld [vmem:[#allocation5 + $0x28] sm:$0xff]  ;;  %vm217_vm1 = vcmask 523264  }
  0x49   : > { %595 = vsyncadd (%p820_p6), [#allocation6], 4294966272  ;;  %412 = vmatprep.subr.mxu0 %v620_v0  ;;  %428 = vmatprep.mubr.msk.f32.mxu0 %vm621_vm0, %v620_v0  ;;  %v206_v4 = vld [vmem:[#allocation5 + $0x20] sm:$0xff]  ;;  %v205_v5 = vld [vmem:[#allocation5 + $0x18] sm:$0xff]  ;;  %s400_s17 = sshll.u32 %s664_s16, 7  ;;  %s200_s22 = scalar_lea.vmem [#allocation7], %s394_s21 }
  0x4a   : > { %413 = vmatpush3.msra.mxu0 %v209_v1  ;;  %v204_v6 = vld [vmem:[#allocation5 + $0x10] sm:$0xff]  ;;  %v203_v7 = vld [vmem:[#allocation5 + $0x8] sm:$0xff]  ;;  %v202_v8 = vld [vmem:[#allocation5] sm:$0xff]  ;;  %s307_s23 = sshll.u32 %s200_s22, 4  ;;  %s305_s29 = scalar_lea.hbm %s805_s3, %s400_s17  ;;  %s308_s23 = int_to_ptr.vmem [resolvable:$true] %s307_s23 }
  0x4b   : > { %414 = vmatprep.subr.mxu0 %v620_v0  ;;  %v201_v9 = vld [vmem:[%s174_s27] sm:$0xff]  ;;  %s294_s30 = scalar_lea.sflag [#allocation4], %s749_s11  ;;  %s546_s4 = scalar_lea.vmem %s308_s23, 128 }
  0x4c   : > { %415 = vmatpush3.msra.mxu0 %v208_v2  ;;  %v397_v10 = vld [vmem:[%s804_s2] ss:$0 sm:$0xff]  ;;  %p547_p8 = scmp.ne.s32.totalorder %s308_s23, %s546_s4  ;;  %p821_p3 = scmp.ne.s32.totalorder %s815_s6, 0 }
  0x4d   : > { %416 = vmatprep.subr.mxu0 %v620_v0  ;;  %s622_s8 = smov [#allocation7]  }
  0x4e   : > { %417 = vmatpush3.msra.mxu0 %v207_v3  ;;  %p548_p10 = pnand %p547_p8, %p821_p3  ;;  %s550_s16 = sshll.u32 %s622_s8, 4  ;;  %s551_s16 = int_to_ptr.vmem [resolvable:$false] %s550_s16 }
  0x4f   : > { %418 = vmatprep.subr.mxu0 %v620_v0  ;;  %s552_s7 = scalar_lea.vmem %s551_s16, 256  ;;  %p553_p12 = scmp.lt.s32.totalorder %s308_s23, %s551_s16 }
  0x50   : > { %419 = vmatpush3.msra.mxu0 %v206_v4  ;;  %p549_p7 = pneg %p548_p10  ;;  %p554_p2 = scmp.lt.s32.totalorder %s552_s7, %s546_s4 }
  0x51   : > { %420 = vmatprep.subr.mxu0 %v620_v0 }
  0x52   : > { %421 = vmatpush3.msra.mxu0 %v205_v5  ;;  %p555_p13 = por %p554_p2, %p553_p12 }
  0x53   : > { %422 = vmatprep.subr.mxu0 %v620_v0 }
  0x54   : > { %423 = vmatpush3.msra.mxu0 %v204_v6  ;;  %p556_p0 = pnand %p555_p13, %p549_p7 }
  0x55   : > { %424 = vmatprep.subr.mxu0 %v620_v0 }
  0x56   : > { %425 = vmatpush3.msra.mxu0 %v203_v7 }
  0x57   : > { %426 = vmatprep.subr.mxu0 %v620_v0 }
  0x58   : > { %427 = vmatpush3.msra.mxu0 %v202_v8 }
  0x59   : > { %429 = vmatmul.mubr.msk.f32.vlgmr.msra.gmra.mxu0 %vm217_vm1, %v201_v9 }
 0x119   : > { %v287_v11 = vpop.f32.mrf.mxu0 }
 0x11a   : > { %v288_v12 = vadd.f32 %v397_v10, %v287_v11 }
 0x11b   : > { %v430_v13 = vpop.f32.mrf.mxu0 }
 0x11c   : > { %v291_v14 = vmax.f32 %v288_v12, 0.0 }
 0x11e   : > { %292 = vst [vmem:[%s200_s22] sm:$0xff] %v291_v14 }
 0x11f   : > { %559 = shalt.err (!%p556_p0)
}
 0x120   : > { %s560_s9 = scalar_lea.hbm %s305_s29, 128  ;;  %s564_s21 = scalar_lea.hbm %s805_s3, 512 }
 0x121   : > { %p561_p5 = scmp.ne.s32.totalorder %s305_s29, %s560_s9  ;;  %p565_p1 = scmp.lt.s32.totalorder %s305_s29, %s805_s3 }
 0x122   : > { %p566_p4 = scmp.lt.s32.totalorder %s564_s21, %s560_s9 }
 0x123   : > { %p562_p9 = pnand %p561_p5, %p821_p3 }
 0x124   : > { %p567_p6 = por %p566_p4, %p565_p1 }
 0x125   : > { %p563_p11 = pneg %p562_p9 }
 0x127   : > { %p568_p8 = pnand %p567_p6, %p563_p11 }
 0x129   : > { %571 = shalt.err (!%p568_p8)
}
 0x12a   : > { %437 = dma.vmem_to_hbm [thread:$0]  (%p821_p3), %s308_s23, 128, %s305_s29, %s294_s30  }
 0x12b PF: > { %p454_p10 = scmp.ge.s32.totalorder %s614_s15, 2  ;;  %s319_s18 = sand.u32 1, %s602_s12  }
 0x12c   : > { %p822_p7 = scmp.ne.s32.totalorder %s811_s19, 0  ;;  %s320_s20 = scalar_lea.sflag [#allocation4], %s319_s18 }
 0x12e   : > { %p448_p12 = pnand %p454_p10, %p822_p7 }
 0x130   : > { %p449_p2 = pneg %p448_p12 }
 0x132   : > { %597 = dma.done.wait (%p449_p2), %s320_s20, 128  }
 0x133   : > { %599 = vsyncadd (%p449_p2), %s320_s20, 4294967168  ;;  %p17_p13 = scmp.ge.s32.totalorder %s696_s24, 6   ;;  %s823_s12 = smov %s606_s13 }
 0x134   : > { %s824_s13 = smov %s610_s14  ;;  %s825_s14 = smov %s713_s5 }
 0x135   : > { %s826_s15 = smov %s696_s24  ;;  %19 = sbr.rel (!%p17_p13) target bundleno = 6 (0x6), region = 81 }
 0x13a   :  { %325 = vsyncpa [#allocation3], 1 }
 0x13b   :  { %327 = vsyncpa [#allocation3 + $0x1], 1 }
 0x13c   :  { %328 = vsyncpa [#allocation6], 1 }
 0x13d   :  { %329 = vsyncpa [#allocation4], 1 }
 0x13e   :  { %331 = vsyncpa [#allocation4 + $0x1], 1 }

</bundles_post_ra>
